<compile_context>
chip_gen: v5e
topology: v5e:2x2
jax: 0.10.0
libtpu: 0.0.40
codegen_flags: <defaults>
</compile_context>

<pallas_src>
import functools

import jax
import jax.numpy as jnp
from jax.experimental import pallas as pl
from jax.experimental.pallas import tpu as pltpu

# Standard 20 amino acids -> index (the module only needs its length).
AA_TO_INDEX = {aa: i for i, aa in enumerate("ACDEFGHIKLMNPQRSTVWY")}
VOCAB = len(AA_TO_INDEX) + 1  # matches len(AA_TO_INDEX) + 1 in the module


def _convnet_kernel(tok_ref, emb_ref, *refs, batch, seq, n_conv):
    """tok_ref: (B*S, 1) int32 ; emb_ref: (V, E) f32 ;
    then per conv layer (w, b) with w: (K, Cin, Cout), b: (1, Cout) ;
    then wl: (F_last, O_pad), bl: (1, O_pad) ; finally o_ref: (B, O_pad)."""
    conv_refs = refs[: 2 * n_conv]
    wl_ref = refs[2 * n_conv]
    bl_ref = refs[2 * n_conv + 1]
    o_ref = refs[2 * n_conv + 2]

    vocab = emb_ref.shape[0]
    bs = batch * seq

    # --- Embedding lookup as a one-hot matmul on the MXU (vocab is tiny). ---
    tok = tok_ref[...]                                            # (B*S, 1) int32
    iota_v = jax.lax.broadcasted_iota(jnp.int32, (bs, vocab), 1)  # (B*S, V)
    onehot = (tok == iota_v).astype(jnp.float32)                  # (B*S, V)
    h_all = jnp.dot(onehot, emb_ref[...],
                    preferred_element_type=jnp.float32)           # (B*S, E)

    # --- Conv stack + mean pool, per batch row (batch is tiny -> static unroll). ---
    pooled_rows = []
    for b in range(batch):
        hb = h_all[b * seq:(b + 1) * seq, :]                      # (S, E)
        length = seq
        for layer in range(n_conv):
            w_ref = conv_refs[2 * layer]                          # (K, Cin, Cout)
            b_ref = conv_refs[2 * layer + 1]                      # (1, Cout)
            ksize = w_ref.shape[0]
            cout = w_ref.shape[2]
            lout = length - ksize + 1
            acc = jnp.zeros((lout, cout), jnp.float32)
            for k in range(ksize):                                # K == 3, static
                acc += jnp.dot(hb[k:k + lout, :], w_ref[k],
                               preferred_element_type=jnp.float32)
            acc = acc + b_ref[...]
            if layer != n_conv - 1:
                acc = jnp.maximum(acc, 0.0)                       # ReLU (skip on last)
            hb = acc
            length = lout
        pooled_rows.append(jnp.mean(hb, axis=0, keepdims=True))   # (1, F_last)

    pooled = jnp.concatenate(pooled_rows, axis=0)                 # (B, F_last)

    # --- Final Linear into a lane-dense (128-wide) padded output block. ---
    out = jnp.dot(pooled, wl_ref[...],
                  preferred_element_type=jnp.float32) + bl_ref[...]
    o_ref[...] = out.astype(o_ref.dtype)


def convolutional_net(tokens, emb, conv_ws, conv_bs, w_lin, b_lin, *, out_pad=128):
    """Forward pass of ConvolutionalNet via one Pallas kernel.

    tokens: (B, S) int ; emb: (V, E) ; conv_ws[i]: (Cout, Cin, 3) torch layout ;
    conv_bs[i]: (Cout,) ; w_lin: (O, F_last) torch layout ; b_lin: (O,).
    """
    B, S = tokens.shape
    n_conv = len(conv_ws)
    O = w_lin.shape[0]
    o_pad = max(out_pad, O)

    # Re-layout parameters for in-kernel matmuls.
    conv_args = []
    for w, bb in zip(conv_ws, conv_bs):
        conv_args.append(jnp.transpose(w, (2, 1, 0)).astype(jnp.float32))  # (K, Cin, Cout)
        conv_args.append(bb[None, :].astype(jnp.float32))                  # (1, Cout)
    wl = jnp.zeros((w_lin.shape[1], o_pad), jnp.float32).at[:, :O].set(w_lin.T)
    bl = jnp.zeros((1, o_pad), jnp.float32).at[:, :O].set(b_lin[None, :])
    tok2d = tokens.reshape(B * S, 1).astype(jnp.int32)

    inputs = (tok2d, emb.astype(jnp.float32), *conv_args, wl, bl)
    kernel = functools.partial(_convnet_kernel, batch=B, seq=S, n_conv=n_conv)

    out = pl.pallas_call(
        kernel,
        out_shape=jax.ShapeDtypeStruct((B, o_pad), jnp.float32),
        in_specs=[pl.BlockSpec(memory_space=pltpu.MemorySpace.VMEM)] * len(inputs),
        out_specs=pl.BlockSpec(memory_space=pltpu.MemorySpace.VMEM),
    )(*inputs)

    # Matches `output.squeeze()` in the PyTorch module (no-op unless a dim is 1).
    return jnp.squeeze(out[:, :O])


def convolutional_net_ref(tokens, emb, conv_ws, conv_bs, w_lin, b_lin):
    """Pure-JAX reference mirroring the PyTorch forward."""
    h = emb[tokens]                          # (B, S, E)
    h = jnp.transpose(h, (0, 2, 1))          # (B, E, S)  (NCL, like torch)
    for i, (w, bb) in enumerate(zip(conv_ws, conv_bs)):
        h = jax.lax.conv_general_dilated(
            h, w, window_strides=(1,), padding="VALID",
            dimension_numbers=("NCH", "OIH", "NCH"),
            precision=jax.lax.Precision.HIGHEST)
        h = h + bb[None, :, None]
        if i != len(conv_ws) - 1:
            h = jax.nn.relu(h)
    h = h.mean(axis=2)                       # (B, F_last)
    out = jnp.dot(h, w_lin.T, precision=jax.lax.Precision.HIGHEST) + b_lin
    return jnp.squeeze(out)


if __name__ == "__main__":
    key = jax.random.PRNGKey(0)
    B, S = 2, 16                 # batch, sequence length
    E = 8                        # embedding_dimension
    filters = [16, 32]           # conv filter sizes
    O = 4                        # output_dimension

    keys = jax.random.split(key, 3 + 2 * len(filters))
    tokens = jax.random.randint(keys[0], (B, S), 0, VOCAB)
    emb = 0.5 * jax.random.normal(keys[1], (VOCAB, E), dtype=jnp.float32)

    conv_ws, conv_bs = [], []
    chans = [E] + filters
    for i in range(len(filters)):
        conv_ws.append(0.2 * jax.random.normal(
            keys[2 + 2 * i], (chans[i + 1], chans[i], 3), dtype=jnp.float32))
        conv_bs.append(0.1 * jax.random.normal(
            keys[3 + 2 * i], (chans[i + 1],), dtype=jnp.float32))

    k_lin = jax.random.split(keys[-1], 2)
    w_lin = 0.2 * jax.random.normal(k_lin[0], (O, filters[-1]), dtype=jnp.float32)
    b_lin = 0.1 * jax.random.normal(k_lin[1], (O,), dtype=jnp.float32)

    out = convolutional_net(tokens, emb, conv_ws, conv_bs, w_lin, b_lin)
    out = jax.block_until_ready(out)

    ref = convolutional_net_ref(tokens, emb, conv_ws, conv_bs, w_lin, b_lin)
    assert out.shape == (B, O), out.shape
    assert jnp.allclose(out, ref, rtol=5e-3, atol=5e-3), "mismatch vs reference"

    print("KERNEL_OK")
</pallas_src>

<mosaic_0001>
module attributes {stable_mosaic.version = 11 : i64} {
  func.func @_convnet_kernel(%arg0: memref<32x1xi32, #tpu.memory_space<vmem>>, %arg1: memref<21x8xf32, #tpu.memory_space<vmem>>, %arg2: memref<3x8x16xf32, #tpu.memory_space<vmem>>, %arg3: memref<1x16xf32, #tpu.memory_space<vmem>>, %arg4: memref<3x16x32xf32, #tpu.memory_space<vmem>>, %arg5: memref<1x32xf32, #tpu.memory_space<vmem>>, %arg6: memref<32x128xf32, #tpu.memory_space<vmem>>, %arg7: memref<1x128xf32, #tpu.memory_space<vmem>>, %arg8: memref<2x128xf32, #tpu.memory_space<vmem>>) attributes {dimension_semantics = [], scalar_prefetch = 0 : i64, scratch_operands = 0 : i64, tpu.core_type = #tpu.core_type<tc>} {
    %c0 = arith.constant 0 : index
    %c0_0 = arith.constant 0 : index
    %0 = vector.load %arg0[%c0, %c0_0] : memref<32x1xi32, #tpu.memory_space<vmem>>, vector<32x1xi32>
    %1 = tpu.iota {dimensions = array<i32: 1>} : vector<32x21xi32>
    %2 = vector.broadcast %0 : vector<32x1xi32> to vector<32x21xi32>
    %3 = arith.cmpi eq, %2, %1 : vector<32x21xi32>
    %4 = arith.extui %3 : vector<32x21xi1> to vector<32x21xi32>
    %5 = arith.sitofp %4 : vector<32x21xi32> to vector<32x21xf32>
    %c0_1 = arith.constant 0 : index
    %c0_2 = arith.constant 0 : index
    %6 = vector.load %arg1[%c0_1, %c0_2] : memref<21x8xf32, #tpu.memory_space<vmem>>, vector<21x8xf32>
    %cst = arith.constant dense<0.000000e+00> : vector<32x8xf32>
    %7 = tpu.matmul %5, %6, %cst {dimension_numbers = #tpu.dot_dimension_numbers<[1], [0], [0], [1], [0, 0, 1, 1], [], []>} : vector<32x21xf32>, vector<21x8xf32>, vector<32x8xf32> -> vector<32x8xf32>
    %8 = vector.extract_strided_slice %7 {offsets = [0, 0], sizes = [16, 8], strides = [1, 1]} : vector<32x8xf32> to vector<16x8xf32>
    %cst_3 = arith.constant 0.000000e+00 : f32
    %9 = vector.broadcast %cst_3 : f32 to vector<14x16xf32>
    %10 = vector.extract_strided_slice %8 {offsets = [0, 0], sizes = [14, 8], strides = [1, 1]} : vector<16x8xf32> to vector<14x8xf32>
    %c0_4 = arith.constant 0 : index
    %c0_5 = arith.constant 0 : index
    %c0_6 = arith.constant 0 : index
    %11 = vector.load %arg2[%c0_4, %c0_5, %c0_6] : memref<3x8x16xf32, #tpu.memory_space<vmem>>, vector<1x8x16xf32>
    %12 = vector.shape_cast %11 : vector<1x8x16xf32> to vector<8x16xf32>
    %cst_7 = arith.constant dense<0.000000e+00> : vector<14x16xf32>
    %13 = tpu.matmul %10, %12, %cst_7 {dimension_numbers = #tpu.dot_dimension_numbers<[1], [0], [0], [1], [0, 0, 1, 1], [], []>} : vector<14x8xf32>, vector<8x16xf32>, vector<14x16xf32> -> vector<14x16xf32>
    %14 = arith.addf %9, %13 : vector<14x16xf32>
    %15 = vector.extract_strided_slice %8 {offsets = [1, 0], sizes = [14, 8], strides = [1, 1]} : vector<16x8xf32> to vector<14x8xf32>
    %c1 = arith.constant 1 : index
    %c0_8 = arith.constant 0 : index
    %c0_9 = arith.constant 0 : index
    %16 = vector.load %arg2[%c1, %c0_8, %c0_9] : memref<3x8x16xf32, #tpu.memory_space<vmem>>, vector<1x8x16xf32>
    %17 = vector.shape_cast %16 : vector<1x8x16xf32> to vector<8x16xf32>
    %cst_10 = arith.constant dense<0.000000e+00> : vector<14x16xf32>
    %18 = tpu.matmul %15, %17, %cst_10 {dimension_numbers = #tpu.dot_dimension_numbers<[1], [0], [0], [1], [0, 0, 1, 1], [], []>} : vector<14x8xf32>, vector<8x16xf32>, vector<14x16xf32> -> vector<14x16xf32>
    %19 = arith.addf %14, %18 : vector<14x16xf32>
    %20 = vector.extract_strided_slice %8 {offsets = [2, 0], sizes = [14, 8], strides = [1, 1]} : vector<16x8xf32> to vector<14x8xf32>
    %c2 = arith.constant 2 : index
    %c0_11 = arith.constant 0 : index
    %c0_12 = arith.constant 0 : index
    %21 = vector.load %arg2[%c2, %c0_11, %c0_12] : memref<3x8x16xf32, #tpu.memory_space<vmem>>, vector<1x8x16xf32>
    %22 = vector.shape_cast %21 : vector<1x8x16xf32> to vector<8x16xf32>
    %cst_13 = arith.constant dense<0.000000e+00> : vector<14x16xf32>
    %23 = tpu.matmul %20, %22, %cst_13 {dimension_numbers = #tpu.dot_dimension_numbers<[1], [0], [0], [1], [0, 0, 1, 1], [], []>} : vector<14x8xf32>, vector<8x16xf32>, vector<14x16xf32> -> vector<14x16xf32>
    %24 = arith.addf %19, %23 : vector<14x16xf32>
    %c0_14 = arith.constant 0 : index
    %c0_15 = arith.constant 0 : index
    %25 = vector.load %arg3[%c0_14, %c0_15] : memref<1x16xf32, #tpu.memory_space<vmem>>, vector<1x16xf32>
    %26 = vector.broadcast %25 : vector<1x16xf32> to vector<14x16xf32>
    %27 = arith.addf %24, %26 : vector<14x16xf32>
    %cst_16 = arith.constant 0.000000e+00 : f32
    %28 = vector.broadcast %cst_16 : f32 to vector<14x16xf32>
    %29 = arith.maximumf %27, %28 : vector<14x16xf32>
    %cst_17 = arith.constant 0.000000e+00 : f32
    %30 = vector.broadcast %cst_17 : f32 to vector<12x32xf32>
    %31 = vector.extract_strided_slice %29 {offsets = [0, 0], sizes = [12, 16], strides = [1, 1]} : vector<14x16xf32> to vector<12x16xf32>
    %c0_18 = arith.constant 0 : index
    %c0_19 = arith.constant 0 : index
    %c0_20 = arith.constant 0 : index
    %32 = vector.load %arg4[%c0_18, %c0_19, %c0_20] : memref<3x16x32xf32, #tpu.memory_space<vmem>>, vector<1x16x32xf32>
    %33 = vector.shape_cast %32 : vector<1x16x32xf32> to vector<16x32xf32>
    %cst_21 = arith.constant dense<0.000000e+00> : vector<12x32xf32>
    %34 = tpu.matmul %31, %33, %cst_21 {dimension_numbers = #tpu.dot_dimension_numbers<[1], [0], [0], [1], [0, 0, 1, 1], [], []>} : vector<12x16xf32>, vector<16x32xf32>, vector<12x32xf32> -> vector<12x32xf32>
    %35 = arith.addf %30, %34 : vector<12x32xf32>
    %36 = vector.extract_strided_slice %29 {offsets = [1, 0], sizes = [12, 16], strides = [1, 1]} : vector<14x16xf32> to vector<12x16xf32>
    %c1_22 = arith.constant 1 : index
    %c0_23 = arith.constant 0 : index
    %c0_24 = arith.constant 0 : index
    %37 = vector.load %arg4[%c1_22, %c0_23, %c0_24] : memref<3x16x32xf32, #tpu.memory_space<vmem>>, vector<1x16x32xf32>
    %38 = vector.shape_cast %37 : vector<1x16x32xf32> to vector<16x32xf32>
    %cst_25 = arith.constant dense<0.000000e+00> : vector<12x32xf32>
    %39 = tpu.matmul %36, %38, %cst_25 {dimension_numbers = #tpu.dot_dimension_numbers<[1], [0], [0], [1], [0, 0, 1, 1], [], []>} : vector<12x16xf32>, vector<16x32xf32>, vector<12x32xf32> -> vector<12x32xf32>
    %40 = arith.addf %35, %39 : vector<12x32xf32>
    %41 = vector.extract_strided_slice %29 {offsets = [2, 0], sizes = [12, 16], strides = [1, 1]} : vector<14x16xf32> to vector<12x16xf32>
    %c2_26 = arith.constant 2 : index
    %c0_27 = arith.constant 0 : index
    %c0_28 = arith.constant 0 : index
    %42 = vector.load %arg4[%c2_26, %c0_27, %c0_28] : memref<3x16x32xf32, #tpu.memory_space<vmem>>, vector<1x16x32xf32>
    %43 = vector.shape_cast %42 : vector<1x16x32xf32> to vector<16x32xf32>
    %cst_29 = arith.constant dense<0.000000e+00> : vector<12x32xf32>
    %44 = tpu.matmul %41, %43, %cst_29 {dimension_numbers = #tpu.dot_dimension_numbers<[1], [0], [0], [1], [0, 0, 1, 1], [], []>} : vector<12x16xf32>, vector<16x32xf32>, vector<12x32xf32> -> vector<12x32xf32>
    %45 = arith.addf %40, %44 : vector<12x32xf32>
    %c0_30 = arith.constant 0 : index
    %c0_31 = arith.constant 0 : index
    %46 = vector.load %arg5[%c0_30, %c0_31] : memref<1x32xf32, #tpu.memory_space<vmem>>, vector<1x32xf32>
    %47 = vector.broadcast %46 : vector<1x32xf32> to vector<12x32xf32>
    %48 = arith.addf %45, %47 : vector<12x32xf32>
    %cst_32 = arith.constant dense<0.000000e+00> : vector<32xf32>
    %49 = vector.multi_reduction <add>, %48, %cst_32 [0] : vector<12x32xf32> to vector<32xf32>
    %50 = vector.shape_cast %49 : vector<32xf32> to vector<1x32xf32>
    %cst_33 = arith.constant 1.200000e+01 : f32
    %51 = vector.broadcast %cst_33 : f32 to vector<1x32xf32>
    %52 = arith.divf %50, %51 : vector<1x32xf32>
    %53 = vector.extract_strided_slice %7 {offsets = [16, 0], sizes = [16, 8], strides = [1, 1]} : vector<32x8xf32> to vector<16x8xf32>
    %cst_34 = arith.constant 0.000000e+00 : f32
    %54 = vector.broadcast %cst_34 : f32 to vector<14x16xf32>
    %55 = vector.extract_strided_slice %53 {offsets = [0, 0], sizes = [14, 8], strides = [1, 1]} : vector<16x8xf32> to vector<14x8xf32>
    %c0_35 = arith.constant 0 : index
    %c0_36 = arith.constant 0 : index
    %c0_37 = arith.constant 0 : index
    %56 = vector.load %arg2[%c0_35, %c0_36, %c0_37] : memref<3x8x16xf32, #tpu.memory_space<vmem>>, vector<1x8x16xf32>
    %57 = vector.shape_cast %56 : vector<1x8x16xf32> to vector<8x16xf32>
    %cst_38 = arith.constant dense<0.000000e+00> : vector<14x16xf32>
    %58 = tpu.matmul %55, %57, %cst_38 {dimension_numbers = #tpu.dot_dimension_numbers<[1], [0], [0], [1], [0, 0, 1, 1], [], []>} : vector<14x8xf32>, vector<8x16xf32>, vector<14x16xf32> -> vector<14x16xf32>
    %59 = arith.addf %54, %58 : vector<14x16xf32>
    %60 = vector.extract_strided_slice %53 {offsets = [1, 0], sizes = [14, 8], strides = [1, 1]} : vector<16x8xf32> to vector<14x8xf32>
    %c1_39 = arith.constant 1 : index
    %c0_40 = arith.constant 0 : index
    %c0_41 = arith.constant 0 : index
    %61 = vector.load %arg2[%c1_39, %c0_40, %c0_41] : memref<3x8x16xf32, #tpu.memory_space<vmem>>, vector<1x8x16xf32>
    %62 = vector.shape_cast %61 : vector<1x8x16xf32> to vector<8x16xf32>
    %cst_42 = arith.constant dense<0.000000e+00> : vector<14x16xf32>
    %63 = tpu.matmul %60, %62, %cst_42 {dimension_numbers = #tpu.dot_dimension_numbers<[1], [0], [0], [1], [0, 0, 1, 1], [], []>} : vector<14x8xf32>, vector<8x16xf32>, vector<14x16xf32> -> vector<14x16xf32>
    %64 = arith.addf %59, %63 : vector<14x16xf32>
    %65 = vector.extract_strided_slice %53 {offsets = [2, 0], sizes = [14, 8], strides = [1, 1]} : vector<16x8xf32> to vector<14x8xf32>
    %c2_43 = arith.constant 2 : index
    %c0_44 = arith.constant 0 : index
    %c0_45 = arith.constant 0 : index
    %66 = vector.load %arg2[%c2_43, %c0_44, %c0_45] : memref<3x8x16xf32, #tpu.memory_space<vmem>>, vector<1x8x16xf32>
    %67 = vector.shape_cast %66 : vector<1x8x16xf32> to vector<8x16xf32>
    %cst_46 = arith.constant dense<0.000000e+00> : vector<14x16xf32>
    %68 = tpu.matmul %65, %67, %cst_46 {dimension_numbers = #tpu.dot_dimension_numbers<[1], [0], [0], [1], [0, 0, 1, 1], [], []>} : vector<14x8xf32>, vector<8x16xf32>, vector<14x16xf32> -> vector<14x16xf32>
    %69 = arith.addf %64, %68 : vector<14x16xf32>
    %c0_47 = arith.constant 0 : index
    %c0_48 = arith.constant 0 : index
    %70 = vector.load %arg3[%c0_47, %c0_48] : memref<1x16xf32, #tpu.memory_space<vmem>>, vector<1x16xf32>
    %71 = vector.broadcast %70 : vector<1x16xf32> to vector<14x16xf32>
    %72 = arith.addf %69, %71 : vector<14x16xf32>
    %cst_49 = arith.constant 0.000000e+00 : f32
    %73 = vector.broadcast %cst_49 : f32 to vector<14x16xf32>
    %74 = arith.maximumf %72, %73 : vector<14x16xf32>
    %cst_50 = arith.constant 0.000000e+00 : f32
    %75 = vector.broadcast %cst_50 : f32 to vector<12x32xf32>
    %76 = vector.extract_strided_slice %74 {offsets = [0, 0], sizes = [12, 16], strides = [1, 1]} : vector<14x16xf32> to vector<12x16xf32>
    %c0_51 = arith.constant 0 : index
    %c0_52 = arith.constant 0 : index
    %c0_53 = arith.constant 0 : index
    %77 = vector.load %arg4[%c0_51, %c0_52, %c0_53] : memref<3x16x32xf32, #tpu.memory_space<vmem>>, vector<1x16x32xf32>
    %78 = vector.shape_cast %77 : vector<1x16x32xf32> to vector<16x32xf32>
    %cst_54 = arith.constant dense<0.000000e+00> : vector<12x32xf32>
    %79 = tpu.matmul %76, %78, %cst_54 {dimension_numbers = #tpu.dot_dimension_numbers<[1], [0], [0], [1], [0, 0, 1, 1], [], []>} : vector<12x16xf32>, vector<16x32xf32>, vector<12x32xf32> -> vector<12x32xf32>
    %80 = arith.addf %75, %79 : vector<12x32xf32>
    %81 = vector.extract_strided_slice %74 {offsets = [1, 0], sizes = [12, 16], strides = [1, 1]} : vector<14x16xf32> to vector<12x16xf32>
    %c1_55 = arith.constant 1 : index
    %c0_56 = arith.constant 0 : index
    %c0_57 = arith.constant 0 : index
    %82 = vector.load %arg4[%c1_55, %c0_56, %c0_57] : memref<3x16x32xf32, #tpu.memory_space<vmem>>, vector<1x16x32xf32>
    %83 = vector.shape_cast %82 : vector<1x16x32xf32> to vector<16x32xf32>
    %cst_58 = arith.constant dense<0.000000e+00> : vector<12x32xf32>
    %84 = tpu.matmul %81, %83, %cst_58 {dimension_numbers = #tpu.dot_dimension_numbers<[1], [0], [0], [1], [0, 0, 1, 1], [], []>} : vector<12x16xf32>, vector<16x32xf32>, vector<12x32xf32> -> vector<12x32xf32>
    %85 = arith.addf %80, %84 : vector<12x32xf32>
    %86 = vector.extract_strided_slice %74 {offsets = [2, 0], sizes = [12, 16], strides = [1, 1]} : vector<14x16xf32> to vector<12x16xf32>
    %c2_59 = arith.constant 2 : index
    %c0_60 = arith.constant 0 : index
    %c0_61 = arith.constant 0 : index
    %87 = vector.load %arg4[%c2_59, %c0_60, %c0_61] : memref<3x16x32xf32, #tpu.memory_space<vmem>>, vector<1x16x32xf32>
    %88 = vector.shape_cast %87 : vector<1x16x32xf32> to vector<16x32xf32>
    %cst_62 = arith.constant dense<0.000000e+00> : vector<12x32xf32>
    %89 = tpu.matmul %86, %88, %cst_62 {dimension_numbers = #tpu.dot_dimension_numbers<[1], [0], [0], [1], [0, 0, 1, 1], [], []>} : vector<12x16xf32>, vector<16x32xf32>, vector<12x32xf32> -> vector<12x32xf32>
    %90 = arith.addf %85, %89 : vector<12x32xf32>
    %c0_63 = arith.constant 0 : index
    %c0_64 = arith.constant 0 : index
    %91 = vector.load %arg5[%c0_63, %c0_64] : memref<1x32xf32, #tpu.memory_space<vmem>>, vector<1x32xf32>
    %92 = vector.broadcast %91 : vector<1x32xf32> to vector<12x32xf32>
    %93 = arith.addf %90, %92 : vector<12x32xf32>
    %cst_65 = arith.constant dense<0.000000e+00> : vector<32xf32>
    %94 = vector.multi_reduction <add>, %93, %cst_65 [0] : vector<12x32xf32> to vector<32xf32>
    %95 = vector.shape_cast %94 : vector<32xf32> to vector<1x32xf32>
    %cst_66 = arith.constant 1.200000e+01 : f32
    %96 = vector.broadcast %cst_66 : f32 to vector<1x32xf32>
    %97 = arith.divf %95, %96 : vector<1x32xf32>
    %98 = tpu.concatenate %52, %97 in 0 : vector<1x32xf32>, vector<1x32xf32> -> vector<2x32xf32>
    %c0_67 = arith.constant 0 : index
    %c0_68 = arith.constant 0 : index
    %99 = vector.load %arg6[%c0_67, %c0_68] : memref<32x128xf32, #tpu.memory_space<vmem>>, vector<32x128xf32>
    %cst_69 = arith.constant dense<0.000000e+00> : vector<2x128xf32>
    %100 = tpu.matmul %98, %99, %cst_69 {dimension_numbers = #tpu.dot_dimension_numbers<[1], [0], [0], [1], [0, 0, 1, 1], [], []>} : vector<2x32xf32>, vector<32x128xf32>, vector<2x128xf32> -> vector<2x128xf32>
    %c0_70 = arith.constant 0 : index
    %c0_71 = arith.constant 0 : index
    %101 = vector.load %arg7[%c0_70, %c0_71] : memref<1x128xf32, #tpu.memory_space<vmem>>, vector<1x128xf32>
    %102 = vector.broadcast %101 : vector<1x128xf32> to vector<2x128xf32>
    %103 = arith.addf %100, %102 : vector<2x128xf32>
    %c0_72 = arith.constant 0 : index
    %c0_73 = arith.constant 0 : index
    %104 = vector.load %arg8[%c0_72, %c0_73] : memref<2x128xf32, #tpu.memory_space<vmem>>, vector<2x128xf32>
    tpu.vector_store %arg8[%c0_72, %c0_73], %103 {strides = array<i32>} : memref<2x128xf32, #tpu.memory_space<vmem>>, vector<2x128xf32>,
    return
  }
}

</mosaic_0001>

<bundles_post_ra>
// kernel: tpu_custom_call.1
= control target key start
LH: loop header
LB: loop body
LE: loop exit
PB: predicated region body
PF: predicated region fallthrough
CT: control target
= control target key end

     0   :  { %13 = vsyncpa [#allocation3], 0  ;;  %s912_s0 = inlined_call_operand.vmem [shape: s32[32,1], index: 0, kind: input, shape index: {}]   ;;  %s913_s1 = inlined_call_operand.vmem [shape: f32[21,8], index: 1, kind: input, shape index: {}]   ;;  %s914_s2 = inlined_call_operand.hbm [shape: f32[3,8,16], index: 2, kind: input, shape index: {}]   ;;  %s915_s3 = inlined_call_operand.vmem [shape: f32[1,16], index: 3, kind: input, shape index: {}]   ;;  %s916_s4 = inlined_call_operand.vmem [shape: f32[3,16,32], index: 4, kind: input, shape index: {}]   ;;  %s917_s5 = inlined_call_operand.vmem [shape: f32[1,32], index: 5, kind: input, shape index: {}]   ;;  %s918_s6 = inlined_call_operand.hbm [shape: f32[32,128], index: 6, kind: input, shape index: {}]   ;;  %s919_s7 = inlined_call_operand.vmem [shape: f32[1,128], index: 7, kind: input, shape index: {}]   ;;  %s920_s8 = inlined_call_operand.hbm [shape: f32[2,128], index: 8, kind: output, shape index: {}]  }
   0x1   :  { %14 = vsyncpa [#allocation6], 0 }
   0x2   :  { %15 = vsyncpa [#allocation4], 0  ;;  %s24_s29 = sshll.u32 %s914_s2, 4  ;;  %s755_s30 = smov [#allocation2]   ;;  %s25_s29 = int_to_ptr.hbm [resolvable:$true] %s24_s29 }
   0x3   :  { %s26_s9 = sshll.u32 %s755_s30, 4  ;;  %s43_s12 = sshll.u32 %s918_s6, 4  ;;  %s27_s9 = int_to_ptr.vmem [resolvable:$true] %s26_s9  ;;  %s44_s12 = int_to_ptr.hbm [resolvable:$true] %s43_s12 }
   0x4   :  { %s756_s13 = smov 128   ;;  %s757_s14 = smov 8  }
   0x5   :  { %32 = dma.hbm_to_vmem [thread:$0]  %s25_s29, 384, %s27_s9, [#allocation3], %s756_s13, %s756_s13, %s757_s14  }
   0x6   :  { %s758_s15 = smov [#allocation5]  }
   0x7   :  { %s45_s16 = sshll.u32 %s758_s15, 4  ;;  %s46_s16 = int_to_ptr.vmem [resolvable:$true] %s45_s16 }
   0x8   :  { %51 = dma.hbm_to_vmem [thread:$0]  %s44_s12, 512, %s46_s16, [#allocation6], %s756_s13, %s756_s13, %s757_s14  }
   0x9   :  { %749 = dma.done.wait [#allocation3], 384  }
   0xa   :  { %750 = vsyncadd [#allocation3], 4294966912 }
   0xb   :  { %751 = dma.done.wait [#allocation6], 512  }
   0xc   :  { %752 = vsyncadd [#allocation6], 4294966784  ;;  %v759_v0 = vmov 0   ;;  %vm108_vm0 = vcmask 1044480   ;;  %v62_v1 = vld [vmem:[%s912_s0] sm:$0xff]  ;;  %v93_v3 = vld [vmem:[%s913_s1 + $0x8] sm:$0xff]  ;;  %v66_v9 = vlaneseq }
   0xd   :  { %670 = vset.pattern.permute.xlu0 %v759_v0  ;;  %671 = vset.pattern.permute.xlu1 %v759_v0  ;;  %v94_v2 = vld [vmem:[%s913_s1 + $0x10] sm:$0x1f]  ;;  %v63_v4 = vld [vmem:[%s912_s0 + $0x8] sm:$0xff]  ;;  %v92_v5 = vld [vmem:[%s913_s1] sm:$0xff]  ;;  %vm95_vm1 = vcmask 171008   ;;  %v760_v12 = vmov 0.0  }
   0xe   :  { %69 = vperm.xlu0 %670, %v62_v1   ;;  %627 = vmatpush.msk.msra.mxu0 %vm108_vm0, %v94_v2  ;;  %v64_v6 = vld [vmem:[%s912_s0 + $0x10] sm:$0xff]  ;;  %v65_v7 = vld [vmem:[%s912_s0 + $0x18] sm:$0xff]  ;;  %v143_v8 = vld [vmem:[#allocation2 + $0x8] sm:$0xff]  ;;  %v67_v10 = vand.u32 127, %v66_v9  ;;  %vm150_vm6 = vcmask 64512   ;;  %vm146_vm7 = vcmask 1046528  }
   0xf   :  { %75 = vperm.xlu1 %671, %v64_v6   ;;  %661 = vmatpush.msra.mxu1 %v143_v8  ;;  %v141_v18 = vld [vmem:[#allocation2] sm:$0xff]  ;;  %v206_v21 = vld [vmem:[#allocation2 + $0x10] sm:$0xff]  ;;  %vm207_vm8 = vcmask 1045504   ;;  %v249_v30 = vld [vmem:[%s916_s4 + $0x8] sm:$0xff]  ;;  %vm258_vm9 = vcmask 130048   ;;  %vm354_vm10 = vcmask 261120  }
  0x10   :  { %126 = vmatpush.msra.mxu0 %v93_v3  ;;  %197 = vmatpush.msra.mxu2 %v141_v18  ;;  %v248_v31 = vld [vmem:[%s916_s4] sm:$0xff]  ;;  %v645_v32 = vld [vmem:[%s916_s4 + $0x28] sm:$0xff]  ;;  %v639_v34 = vld [vmem:[%s916_s4 + $0x18] sm:$0xff]  ;;  %vm356_vm11 = vcmask 257024   ;;  %vm571_vm13 = vcmask 1040384   ;;  %s762_s18 = smov [#allocation7]  }
  0x11   :  { %230 = vmatpush.msra.mxu3 %v206_v21  ;;  %v644_v35 = vld [vmem:[%s916_s4 + $0x20] sm:$0xff]  ;;  %277 = vmatpush.msrb.mxu1 %v639_v34  ;;  %v638_v36 = vld [vmem:[%s916_s4 + $0x10] sm:$0xff]  ;;  %s610_s19 = sshll.u32 %s762_s18, 4  ;;  %s612_s22 = sshll.u32 %s920_s8, 4  ;;  %s611_s19 = int_to_ptr.vmem [resolvable:$true] %s610_s19  ;;  %s613_s22 = int_to_ptr.hbm [resolvable:$true] %s612_s22 }
  0x12   :  { %127 = vmatpush.msra.mxu0 %v92_v5  ;;  %304 = vmatpush.msrb.mxu2 %v249_v30  ;;  %v868_v41 = vld [vmem:[%s915_s3] ss:$0 sm:$0xff] }
  0x13   :  { %337 = vmatpush.msrb.mxu3 %v645_v32  ;;  %278 = vmatpush.msrb.mxu1 %v638_v36  ;;  %v673_v9 = vld [vmem:[%s917_s5] ss:$0 sm:$0xff] }
  0x14   :  { %170 = vmatpush.msrb.mxu0 %v143_v8  ;;  %305 = vmatpush.msrb.mxu2 %v248_v31 }
  0x15   :  { %338 = vmatpush.msrb.mxu3 %v644_v35 }
  0x16   :  { %72 = vperm.xlu0 %670, %v63_v4  }
  0x17   :  { %78 = vperm.xlu1 %671, %v65_v7  }
  0x80   :  { %v70_v11 = vpop.permute.xlu0 %69 }
  0x81   :  { %vm80_vm2 = vcmp.eq.s32.totalorder %v70_v11, %v67_v10  ;;  %v76_v16 = vpop.permute.xlu1 %75 }
  0x82   :  { %v623_v13 = vsel %vm80_vm2, 1.0, %v760_v12  ;;  %vm82_vm4 = vcmp.eq.s32.totalorder %v76_v16, %v67_v10 }
  0x83   :  { %628 = vmatmul.msk.f32.vlgmr.msra.gmra.mxu0 %vm95_vm1, %v623_v13  ;;  %v625_v17 = vsel %vm82_vm4, 1.0, %v760_v12 }
  0x84   :  { %491 = vmatpush.msra.mxu0 %v639_v34 }
  0x86   :  { %492 = vmatpush.msra.mxu0 %v638_v36 }
  0x88   :  { %v73_v14 = vpop.permute.xlu0 %72 }
  0x89   :  { %vm81_vm3 = vcmp.eq.s32.totalorder %v73_v14, %v67_v10  ;;  %v79_v19 = vpop.permute.xlu1 %78 }
  0x8a   :  { %v624_v15 = vsel %vm81_vm3, 1.0, %v760_v12  ;;  %vm83_vm5 = vcmp.eq.s32.totalorder %v79_v19, %v67_v10 }
  0x8b   :  { %629 = vmatmul.msk.f32.gmra.mxu0 %vm95_vm1, %v624_v15  ;;  %v626_v20 = vsel %vm83_vm5, 1.0, %v760_v12 }
  0x93   :  { %630 = vmatmul.msk.f32.gmra.mxu0 %vm95_vm1, %v625_v17 }
  0x9b   :  { %631 = vmatmul.msk.f32.gmra.mxu0 %vm95_vm1, %v626_v20 }
 0x100   :  { %v129_v22 = vpop.f32.mrf.mxu0 }
 0x101   :  { %634 = vmatmul.msk.f32.vlgmr.msra.gmra.mxu2 %vm150_vm6, %v129_v22  ;;  %v147_v24 = vrot.slane %v129_v22, 1  ;;  %v208_v25 = vrot.slane %v129_v22, 2 }
 0x102   :  { %424 = vmatpush.msra.mxu2 %v141_v18 }
 0x108   :  { %v132_v23 = vpop.f32.mrf.mxu0 }
 0x109   :  { %v148_v26 = vrot.slane %v132_v23, 1  ;;  %v209_v27 = vrot.slane %v132_v23, 2  ;;  %635 = vmatmul.msk.f32.gmra.mxu2 %vm150_vm6, %v132_v23 }
 0x10b   :  { %633 = vmatmul.msk.f32.vlgmr.msra.gmra.mxu1 %vm150_vm6, %v148_v26  ;;  %v149_v28 = vsel %vm146_vm7, %v147_v24, %v148_v26  ;;  %v210_v29 = vsel %vm207_vm8, %v208_v25, %v209_v27 }
 0x10c   :  { %632 = vmatmul.msk.f32.vlgmr.msrb.gmra.mxu0 %vm150_vm6, %v149_v28  ;;  %636 = vmatmul.msk.f32.vlgmr.msra.gmra.mxu3 %vm150_vm6, %v210_v29 }
 0x10d   :  { %454 = vmatpush.msra.mxu3 %v206_v21  ;;  %397 = vmatpush.msra.mxu1 %v143_v8 }
 0x110   :  { %v135_v33 = vpop.f32.mrf.mxu0 }
 0x111   :  { %v375_v59 = vrot.slane %v135_v33, 1  ;;  %v432_v60 = vrot.slane %v135_v33, 2 }
 0x114   :  { %637 = vmatmul.msk.f32.gmra.mxu3 %vm150_vm6, %v209_v27 }
 0x118   :  { %v138_v37 = vpop.f32.mrf.mxu0 }
 0x119   :  { %v376_v61 = vrot.slane %v138_v37, 1  ;;  %v433_v62 = vrot.slane %v138_v37, 2 }
 0x11b   :  { %v377_v63 = vsel %vm146_vm7, %v375_v59, %v376_v61  ;;  %v434_v0 = vsel %vm207_vm8, %v432_v60, %v433_v62 }
 0x184   :  { %v199_v38 = vpop.f32.mrf.mxu2 }
 0x188   :  { %v175_v47 = vpop.f32.mrf.mxu1 }
 0x189   :  { %v172_v39 = vpop.f32.mrf.mxu0 }
 0x18a   :  { %v200_v40 = vadd.f32 %v199_v38, %v172_v39  ;;  %v575_v38 = vld [vmem:[#allocation5 + $0x10] sm:$0xff] }
 0x18c   :  { %v202_v45 = vpop.f32.mrf.mxu2 }
 0x18d   :  { %v203_v48 = vadd.f32 %v202_v45, %v175_v47 }
 0x18f   :  { %v232_v42 = vpop.f32.mrf.mxu3 }
 0x190   :  { %v238_v43 = vadd.f32 %v232_v42, %v200_v40  ;;  %v574_v40 = vld [vmem:[#allocation5 + $0x8] sm:$0xff] }
 0x192   :  { %v244_v44 = vadd.f32 %v868_v41, %v238_v43 }
 0x194   :  { %v246_v46 = vmax.f32 %v244_v44, 0.0  ;;  %v761_v44 = vmov 12.0  }
 0x195   :  { %675 = vrcp.f32 %v761_v44 }
 0x196   :  { %642 = vmatmul.msk.f32.vlgmr.msrb.gmra.mxu2 %vm258_vm9, %v246_v46  ;;  %v255_v53 = vrot.slane %v246_v46, 1  ;;  %v316_v54 = vrot.slane %v246_v46, 2 }
 0x197   :  { %v235_v49 = vpop.f32.mrf.mxu3  ;;  %548 = vmatpush.msrb.mxu2 %v645_v32 }
 0x198   :  { %v239_v50 = vadd.f32 %v235_v49, %v203_v48 }
 0x199   :  { %549 = vmatpush.msrb.mxu2 %v644_v35 }
 0x19a   :  { %v245_v51 = vadd.f32 %v868_v41, %v239_v50 }
 0x19b   :  { %v676_v49 = vpop.eup %675 }
 0x19c   :  { %v247_v52 = vmax.f32 %v245_v51, 0.0  ;;  %vm370_vm12 = vweird.f32 %v676_v49 }
 0x19e   :  { %v256_v55 = vrot.slane %v247_v52, 1  ;;  %v317_v56 = vrot.slane %v247_v52, 2  ;;  %643 = vmatmul.msk.f32.gmra.mxu2 %vm258_vm9, %v247_v52 }
 0x1a0   :  { %v257_v57 = vsel %vm146_vm7, %v255_v53, %v256_v55  ;;  %v318_v58 = vsel %vm207_vm8, %v316_v54, %v317_v56 }
 0x1a1   :  { %640 = vmatmul.msk.f32.vlgmr.msrb.gmra.mxu1 %vm258_vm9, %v257_v57  ;;  %646 = vmatmul.msk.f32.vlgmr.msrb.gmra.mxu3 %vm258_vm9, %v318_v58 }
 0x1a2   :  { %518 = vmatpush.msrb.mxu1 %v249_v30 }
 0x1a4   :  { %519 = vmatpush.msrb.mxu1 %v248_v31 }
 0x1a6   :  { %650 = vmatmul.msk.f32.vlgmr.msra.gmra.mxu2 %vm150_vm6, %v135_v33 }
 0x1a9   :  { %641 = vmatmul.msk.f32.gmra.mxu1 %vm258_vm9, %v256_v55  ;;  %647 = vmatmul.msk.f32.gmra.mxu3 %vm258_vm9, %v317_v56  ;;  %v366_v56 = vmul.f32 12.0, %v676_v49 }
 0x1ae   :  { %651 = vmatmul.msk.f32.gmra.mxu2 %vm150_vm6, %v138_v37  ;;  %v576_v37 = vld [vmem:[#allocation5 + $0x18] sm:$0xff] }
 0x1af   :  { %596 = vmatpush.msrb.mxu3 %v576_v37 }
 0x1b1   :  { %648 = vmatmul.msk.f32.vlgmr.msra.gmra.mxu1 %vm150_vm6, %v377_v63  ;;  %652 = vmatmul.msk.f32.vlgmr.msra.gmra.mxu3 %vm150_vm6, %v434_v0 }
 0x1b2   :  { %597 = vmatpush.msrb.mxu3 %v575_v38 }
 0x1b4   :  { %598 = vmatpush.msrb.mxu3 %v574_v40 }
 0x1b9   :  { %649 = vmatmul.msk.f32.gmra.mxu1 %vm150_vm6, %v376_v61  ;;  %653 = vmatmul.msk.f32.gmra.mxu3 %vm150_vm6, %v433_v62  ;;  %v367_v61 = vsub.f32 1.0, %v366_v56 }
 0x219   :  { %v307_v1 = vpop.f32.mrf.mxu2 }
 0x21e   :  { %v280_v2 = vpop.f32.mrf.mxu1 }
 0x21f   :  { %v308_v3 = vadd.f32 %v307_v1, %v280_v2  ;;  %v368_v1 = vmul.f32 %v676_v49, %v367_v61 }
 0x221   :  { %v310_v6 = vpop.f32.mrf.mxu2 }
 0x224   :  { %v340_v4 = vpop.f32.mrf.mxu3 }
 0x225   :  { %v346_v5 = vadd.f32 %v340_v4, %v308_v3 }
 0x226   :  { %v283_v7 = vpop.f32.mrf.mxu1 }
 0x227   :  { %v311_v8 = vadd.f32 %v310_v6, %v283_v7  ;;  %v352_v11 = vadd.f32 %v673_v9, %v346_v5  ;;  %v369_v5 = vadd.f32 %v676_v49, %v368_v1 }
 0x229   :  { %v426_v15 = vpop.f32.mrf.mxu2  ;;  %v355_v16 = vsel %vm354_vm10, %v352_v11, 0.0 }
 0x22c   :  { %v343_v10 = vpop.f32.mrf.mxu3 }
 0x22d   :  { %v347_v12 = vadd.f32 %v343_v10, %v311_v8  ;;  %v371_v10 = vsel %vm370_vm12, %v676_v49, %v369_v5 }
 0x22e   :  { %v399_v13 = vpop.f32.mrf.mxu1 }
 0x22f   :  { %v353_v14 = vadd.f32 %v673_v9, %v347_v12  ;;  %v427_v19 = vadd.f32 %v426_v15, %v399_v13 }
 0x231   :  { %v357_v17 = vsel %vm356_vm11, %v353_v14, 0.0  ;;  %v429_v25 = vpop.f32.mrf.mxu2  ;;  %v674_v14 = vld [vmem:[%s919_s7] ss:$0 sm:$0xff] }
 0x232   :  { %v358_v18 = vadd.f32 %v357_v17, %v355_v16 }
 0x234   :  { %v456_v20 = vpop.f32.mrf.mxu3  ;;  %v359_v46 = vrot.slane %v358_v18, 4 }
 0x235   :  { %v462_v21 = vadd.f32 %v456_v20, %v427_v19 }
 0x236   :  { %v402_v23 = vpop.f32.mrf.mxu1  ;;  %v360_v52 = vadd.f32 %v359_v46, %v358_v18 }
 0x237   :  { %v464_v22 = vadd.f32 %v868_v41, %v462_v21  ;;  %v430_v26 = vadd.f32 %v429_v25, %v402_v23 }
 0x238   :  { %v361_v58 = vrot.slane %v360_v52, 2 }
 0x239   :  { %v466_v24 = vmax.f32 %v464_v22, 0.0 }
 0x23a   :  { %v362_v63 = vadd.f32 %v361_v58, %v360_v52 }
 0x23b   :  { %656 = vmatmul.msk.f32.vlgmr.msrb.gmra.mxu1 %vm258_vm9, %v466_v24  ;;  %v470_v31 = vrot.slane %v466_v24, 1  ;;  %v527_v32 = vrot.slane %v466_v24, 2 }
 0x23c   :  { %v459_v27 = vpop.f32.mrf.mxu3  ;;  %v363_v3 = vrot.slane %v362_v63, 1 }
 0x23d   :  { %v463_v28 = vadd.f32 %v459_v27, %v430_v26 }
 0x23e   :  { %v364_v7 = vadd.f32 %v363_v3, %v362_v63 }
 0x23f   :  { %v465_v29 = vadd.f32 %v868_v41, %v463_v28  ;;  %v573_v41 = vld [vmem:[#allocation5] sm:$0xff] }
 0x240   :  { %599 = vmatpush.msrb.mxu3 %v573_v41  ;;  %v372_v11 = vmul.f32 %v371_v10, %v364_v7 }
 0x241   :  { %v467_v30 = vmax.f32 %v465_v29, 0.0 }
 0x243   :  { %v471_v33 = vrot.slane %v467_v30, 1  ;;  %v528_v34 = vrot.slane %v467_v30, 2  ;;  %657 = vmatmul.msk.f32.gmra.mxu1 %vm258_vm9, %v467_v30 }
 0x245   :  { %v472_v35 = vsel %vm146_vm7, %v470_v31, %v471_v33  ;;  %v529_v36 = vsel %vm207_vm8, %v527_v32, %v528_v34 }
 0x246   :  { %654 = vmatmul.msk.f32.vlgmr.msra.gmra.mxu0 %vm258_vm9, %v472_v35  ;;  %658 = vmatmul.msk.f32.vlgmr.msrb.gmra.mxu2 %vm258_vm9, %v529_v36 }
 0x24e   :  { %655 = vmatmul.msk.f32.gmra.mxu0 %vm258_vm9, %v471_v33  ;;  %659 = vmatmul.msk.f32.gmra.mxu2 %vm258_vm9, %v528_v34 }
 0x2b8   :  { %v521_v42 = vpop.f32.mrf.mxu1 }
 0x2c0   :  { %v524_v50 = vpop.f32.mrf.mxu1 }
 0x2c3   :  { %v494_v39 = vpop.f32.mrf.mxu0 }
 0x2c4   :  { %v522_v45 = vadd.f32 %v521_v42, %v494_v39 }
 0x2c9   :  { %v551_v43 = vpop.f32.mrf.mxu2 }
 0x2ca   :  { %v557_v48 = vadd.f32 %v551_v43, %v522_v45 }
 0x2cb   :  { %v497_v47 = vpop.f32.mrf.mxu0 }
 0x2cc   :  { %v525_v51 = vadd.f32 %v524_v50, %v497_v47  ;;  %v559_v54 = vadd.f32 %v673_v9, %v557_v48 }
 0x2ce   :  { %v561_v59 = vsel %vm354_vm10, %v559_v54, 0.0 }
 0x2d1   :  { %v554_v53 = vpop.f32.mrf.mxu2 }
 0x2d2   :  { %v558_v55 = vadd.f32 %v554_v53, %v525_v51 }
 0x2d4   :  { %v560_v57 = vadd.f32 %v673_v9, %v558_v55 }
 0x2d6   :  { %v562_v60 = vsel %vm356_vm11, %v560_v57, 0.0 }
 0x2d7   :  { %v563_v62 = vadd.f32 %v562_v60, %v561_v59 }
 0x2d9   :  { %v564_v0 = vrot.slane %v563_v62, 4 }
 0x2db   :  { %v565_v2 = vadd.f32 %v564_v0, %v563_v62 }
 0x2dd   :  { %v566_v4 = vrot.slane %v565_v2, 2 }
 0x2df   :  { %v567_v6 = vadd.f32 %v566_v4, %v565_v2 }
 0x2e1   :  { %v568_v8 = vrot.slane %v567_v6, 1 }
 0x2e3   :  { %v569_v9 = vadd.f32 %v568_v8, %v567_v6 }
 0x2e5   :  { %v570_v12 = vmul.f32 %v569_v9, %v371_v10 }
 0x2e7   :  { %v572_v13 = vsel %vm571_vm13, %v372_v11, %v570_v12 }
 0x2e8   :  { %660 = vmatmul.msk.f32.vlgmr.msrb.gmra.mxu3 %vm354_vm10, %v572_v13 }
 0x36b   :  { %v601_v15 = vpop.f32.mrf.mxu3 }
 0x36c   :  { %v602_v16 = vadd.f32 %v674_v14, %v601_v15 }
 0x36e   :  { %604 = vst [vmem:[#allocation7] sm:$0x3] %v602_v16 }
 0x36f   :  { %615 = dma.vmem_to_hbm [thread:$0]  %s611_s19, 32, %s613_s22, [#allocation4]  }
 0x370   :  { %753 = dma.done.wait [#allocation4], 32  }
 0x371   :  { %754 = vsyncadd [#allocation4], 4294967264 }
 0x372   :  { %620 = vsyncpa [#allocation3], 1 }
 0x373   :  { %621 = vsyncpa [#allocation6], 1 }
 0x374   :  { %622 = vsyncpa [#allocation4], 1 }

</bundles_post_ra>
